<compile_context>
chip_gen: v5e
topology: v5e:2x2
jax: 0.10.0
libtpu: 0.0.40
codegen_flags: <defaults>
</compile_context>

<pallas_src>
import functools
import math

import jax
import jax.numpy as jnp
from jax.experimental import pallas as pl
from jax.experimental.pallas import tpu as pltpu

_GELU_C = math.sqrt(2.0 / math.pi)
_MXU = 256          # v6e/v7x MXU width; also 2x the 128-lane vreg width.


def _round_up(n, m):
    return ((n + m - 1) // m) * m


def _gated_gelu_kernel(x_ref, w1_ref, b1_ref, w2_ref, b2_ref, o_ref, acc_ref, *, tn):
    """One (row-tile, ffn-tile) grid step of the fused gated-GELU FFN."""
    k = pl.program_id(1)

    @pl.when(k == 0)
    def _():
        acc_ref[...] = jnp.zeros_like(acc_ref)

    # x is DMA'd once per row tile (index_map constant along k); casting to
    # bf16 here is cheap VPU filler and lets the wrapper skip a pad/cast pass
    # whenever shapes are already aligned.
    x = x_ref[...].astype(jnp.bfloat16)                               # (tm, Dp)

    # Single fused MXU pass for this ffn tile's hidden AND gate halves:
    # w1_ref holds [W1_hidden_tile | W1_gate_tile] side by side.
    hg = jnp.dot(x, w1_ref[...], preferred_element_type=jnp.float32)  # (tm, 2*tn)
    hg = hg + b1_ref[pl.ds(k, 1), :]                                  # fused bias row k
    h = hg[:, :tn]                                                    # lane-aligned views
    g = hg[:, tn:]

    # NewGELU (tanh approximation) in f32:
    #   0.5 * g * (1 + tanh(sqrt(2/pi) * g * (1 + 0.044715 * g^2)))
    gelu_g = 0.5 * g * (1.0 + jnp.tanh(_GELU_C * g * (1.0 + 0.044715 * (g * g))))
    hidden = (h * gelu_g).astype(jnp.bfloat16)                        # bf16 for 2nd matmul

    # Second projection: accumulate partial sums over ffn tiles in f32 scratch.
    acc_ref[...] += jnp.dot(hidden, w2_ref[...], preferred_element_type=jnp.float32)

    @pl.when(k == pl.num_programs(1) - 1)
    def _():
        o_ref[...] = (acc_ref[...] + b2_ref[...]).astype(o_ref.dtype)


def prepare_params(params, *, tn=1024):
    """One-time weight prep (hoisted out of the forward path).

    Splits W1 into hidden/gate halves, transposes to (in, out), interleaves
    the two halves per ffn tile into one fused weight block, pads every lane
    dim to a multiple of 256 (full MXU passes on v6e/v7x), and casts weights
    to bf16.  Biases stay f32 and are fused/tiled the same way.
    """
    w1 = jnp.asarray(params["w1"], jnp.float32)
    b1 = jnp.asarray(params["b1"], jnp.float32)
    w2 = jnp.asarray(params["w2"], jnp.float32)
    b2 = jnp.asarray(params["b2"], jnp.float32)

    d_model, ffn = w2.shape                       # PyTorch layout: w2 (d_model, ffn)
    assert w1.shape == (2 * ffn, d_model)

    d_pad = _round_up(d_model, _MXU)
    tn = max(_MXU, min(tn, _round_up(ffn, _MXU)))  # ffn tile width (256-multiple)
    ffn_pad = _round_up(ffn, tn)
    n_k = ffn_pad // tn

    def pad2(a, rows, cols):
        return jnp.pad(a, ((0, rows - a.shape[0]), (0, cols - a.shape[1])))

    # (Dp, FFNp) hidden / gate halves, then interleave per ffn tile so the
    # fused block for tile k is [hidden_tile_k | gate_tile_k] of width 2*tn.
    w1h = pad2(w1[:ffn, :].T, d_pad, ffn_pad)
    w1g = pad2(w1[ffn:, :].T, d_pad, ffn_pad)
    w1f = jnp.stack([w1h.reshape(d_pad, n_k, tn),
                     w1g.reshape(d_pad, n_k, tn)], axis=2)
    w1f = w1f.reshape(d_pad, n_k * 2 * tn).astype(jnp.bfloat16)       # (Dp, n_k*2*tn)

    b1h = jnp.pad(b1[:ffn], (0, ffn_pad - ffn)).reshape(n_k, tn)
    b1g = jnp.pad(b1[ffn:], (0, ffn_pad - ffn)).reshape(n_k, tn)
    b1f = jnp.concatenate([b1h, b1g], axis=1).astype(jnp.float32)     # (n_k, 2*tn)

    w2t = pad2(w2.T, ffn_pad, d_pad).astype(jnp.bfloat16)             # (FFNp, Dp)
    b2r = jnp.pad(b2, (0, d_pad - d_model)).reshape(1, d_pad).astype(jnp.float32)

    return dict(w1f=w1f, b1f=b1f, w2t=w2t, b2=b2r,
                d_model=d_model, ffn=ffn, d_pad=d_pad, ffn_pad=ffn_pad, tn=tn)


def gated_gelu(x, prepared, *, tm=512, vmem_budget_bytes=48 * 1024 * 1024):
    """x: (..., d_model). prepared: output of prepare_params()."""
    d_model = prepared["d_model"]
    ffn = prepared["ffn"]
    d_pad = prepared["d_pad"]
    ffn_pad = prepared["ffn_pad"]
    tn = prepared["tn"]
    n_k = ffn_pad // tn

    orig_shape = x.shape
    assert orig_shape[-1] == d_model
    M = 1
    for s in orig_shape[:-1]:
        M *= s
    x2d = x.reshape(M, d_model)

    out_bytes = jnp.dtype(x.dtype).itemsize
    x_bytes = 2 if d_pad != d_model else out_bytes

    # Row tile: large (weights are re-fetched per row tile, so intensity per
    # weight byte ~= tm).  Shrink only for small M or to fit the VMEM budget.
    if M < tm:
        tm = max(16, _round_up(M, 16))

    def est(tm_):
        return (tm_ * d_pad * x_bytes * 2            # x blocks (double-buffered)
                + d_pad * (2 * tn) * 2 * 2           # fused W1 tile, bf16, x2
                + tn * d_pad * 2 * 2                 # W2 tile, bf16, x2
                + tm_ * d_pad * out_bytes * 2        # output blocks, x2
                + tm_ * d_pad * 4                    # f32 accumulator scratch
                + n_k * 2 * tn * 4 + d_pad * 4)      # resident biases

    while tm > 256 and est(tm) > vmem_budget_bytes:
        tm //= 2
    m_pad = _round_up(M, tm)

    need_pad = (m_pad != M) or (d_pad != d_model)
    if need_pad:
        # Pad + cast in one pass only when unavoidable (read 4B, write 2B).
        xp = jnp.pad(x2d, ((0, m_pad - M), (0, d_pad - d_model))).astype(jnp.bfloat16)
    else:
        xp = x2d                                     # cast to bf16 inside the kernel

    grid = (m_pad // tm, n_k)
    num_row_tiles = grid[0]

    w1f, b1f, w2t, b2r = prepared["w1f"], prepared["b1f"], prepared["w2t"], prepared["b2"]

    cost = pl.CostEstimate(
        flops=6 * M * d_model * ffn,                 # 2 GEMMs for h/g + 1 for out
        transcendentals=M * ffn,                     # tanh per gate element
        bytes_accessed=int(m_pad * d_pad * x_bytes
                           + (w1f.size + w2t.size) * 2 * num_row_tiles  # re-streamed
                           + b1f.size * 4 + b2r.size * 4
                           + m_pad * d_pad * out_bytes),
    )

    vmem_limit = int(min(max(est(tm) * 1.25 + (8 << 20), 32 << 20), 96 << 20))

    # TODO(synk): on v7x, pltpu.CORE_PARALLEL on the row axis would shard the
    # grid across the two TensorCores; kept "parallel" for portability.
    out = pl.pallas_call(
        functools.partial(_gated_gelu_kernel, tn=tn),
        out_shape=jax.ShapeDtypeStruct((m_pad, d_pad), x.dtype),
        grid_spec=pltpu.PrefetchScalarGridSpec(
            num_scalar_prefetch=0,
            grid=grid,
            in_specs=[
                pl.BlockSpec((tm, d_pad), lambda i, k: (i, 0)),        # x rows
                pl.BlockSpec((d_pad, 2 * tn), lambda i, k: (0, k)),    # fused W1 tile
                pl.BlockSpec((n_k, 2 * tn), lambda i, k: (0, 0)),      # fused b1 (resident)
                pl.BlockSpec((tn, d_pad), lambda i, k: (k, 0)),        # W2 tile
                pl.BlockSpec((1, d_pad), lambda i, k: (0, 0)),         # b2 (resident)
            ],
            out_specs=pl.BlockSpec((tm, d_pad), lambda i, k: (i, 0)),
            scratch_shapes=[pltpu.VMEM((tm, d_pad), jnp.float32)],     # f32 accumulator
        ),
        compiler_params=pltpu.CompilerParams(
            dimension_semantics=("parallel", "arbitrary"),
            vmem_limit_bytes=vmem_limit),
        cost_estimate=cost,
    )(xp, w1f, b1f, w2t, b2r)

    if need_pad:
        out = out[:M, :d_model]
    return out.reshape(orig_shape)


def init_params(key, d_model, ffn_dim):
    """Deterministic synthetic parameters, PyTorch nn.Linear layout (out, in)."""
    k1, k2, k3, k4 = jax.random.split(key, 4)
    s1 = 1.0 / math.sqrt(d_model)
    s2 = 1.0 / math.sqrt(ffn_dim)
    return {
        "w1": jax.random.uniform(k1, (ffn_dim * 2, d_model), jnp.float32, -s1, s1),
        "b1": jax.random.uniform(k2, (ffn_dim * 2,), jnp.float32, -s1, s1),
        "w2": jax.random.uniform(k3, (d_model, ffn_dim), jnp.float32, -s2, s2),
        "b2": jax.random.uniform(k4, (d_model,), jnp.float32, -s2, s2),
    }


def _reference(x, params):
    """Pure-JAX f32 reference matching PyTorch semantics."""
    w1, b1, w2, b2 = params["w1"], params["b1"], params["w2"], params["b2"]
    hidden = x @ w1.T + b1
    h, g = jnp.split(hidden, 2, axis=-1)
    gelu_g = 0.5 * g * (1.0 + jnp.tanh(_GELU_C * (g + 0.044715 * g ** 3)))
    return (h * gelu_g) @ w2.T + b2


if __name__ == "__main__":
    batch, seq, d_model = 2, 8, 32
    ffn_dim = d_model * 2            # module default ffn_dim

    key = jax.random.PRNGKey(0)
    kx, kp = jax.random.split(key)
    x = jax.random.normal(kx, (batch, seq, d_model), jnp.float32)
    params = init_params(kp, d_model, ffn_dim)

    prepared = prepare_params(params)            # one-time weight prep (hoisted)
    out = gated_gelu(x, prepared)
    out = jax.block_until_ready(out)

    ref = _reference(x, params)
    assert out.shape == (batch, seq, d_model)
    # bf16 matmul operands with f32 accumulation -> loosen tolerance vs f32 ref.
    assert jnp.allclose(out, ref, atol=3e-2, rtol=3e-2), "mismatch vs reference"

    print("KERNEL_OK")
</pallas_src>

<mosaic_0001>
module attributes {stable_mosaic.version = 11 : i64} {
  func.func @_gated_gelu_kernel(%arg0: i32, %arg1: i32, %arg2: memref<16x256xbf16, #tpu.memory_space<vmem>>, %arg3: memref<256x512xbf16, #tpu.memory_space<vmem>>, %arg4: memref<1x512xf32, #tpu.memory_space<vmem>>, %arg5: memref<256x256xbf16, #tpu.memory_space<vmem>>, %arg6: memref<1x256xf32, #tpu.memory_space<vmem>>, %arg7: memref<16x256xf32, #tpu.memory_space<vmem>>, %arg8: memref<16x256xf32, #tpu.memory_space<vmem>>) attributes {dimension_semantics = [#tpu.dimension_semantics<parallel>, #tpu.dimension_semantics<arbitrary>], iteration_bounds = array<i64: 1, 1>, scalar_prefetch = 0 : i64, scratch_operands = 1 : i64, tpu.core_type = #tpu.core_type<tc>, window_params = [{transform_indices = @transform_0, window_bounds = array<i64: 16, 256>}, {transform_indices = @transform_1, window_bounds = array<i64: 256, 512>}, {pipeline_mode = #tpu.pipeline_mode<synchronous>, transform_indices = @transform_2, window_bounds = array<i64: 1, 512>}, {transform_indices = @transform_3, window_bounds = array<i64: 256, 256>}, {pipeline_mode = #tpu.pipeline_mode<synchronous>, transform_indices = @transform_4, window_bounds = array<i64: 1, 256>}, {transform_indices = @transform_5, window_bounds = array<i64: 16, 256>}]} {
    %c0_i32 = arith.constant 0 : i32
    %0 = arith.cmpi eq, %arg1, %c0_i32 : i32
    %1 = arith.extui %0 : i1 to i32
    %c0_i32_0 = arith.constant 0 : i32
    %2 = arith.cmpi ne, %1, %c0_i32_0 : i32
    scf.if %2 {
      %cst_19 = arith.constant 0.000000e+00 : f32
      %36 = vector.broadcast %cst_19 : f32 to vector<16x256xf32>
      %c0_20 = arith.constant 0 : index
      %c0_21 = arith.constant 0 : index
      %37 = vector.load %arg8[%c0_20, %c0_21] : memref<16x256xf32, #tpu.memory_space<vmem>>, vector<16x256xf32>
      tpu.vector_store %arg8[%c0_20, %c0_21], %36 {strides = array<i32>} : memref<16x256xf32, #tpu.memory_space<vmem>>, vector<16x256xf32>,
    } else {
    }
    %c0 = arith.constant 0 : index
    %c0_1 = arith.constant 0 : index
    %3 = vector.load %arg2[%c0, %c0_1] : memref<16x256xbf16, #tpu.memory_space<vmem>>, vector<16x256xbf16>
    %c0_2 = arith.constant 0 : index
    %c0_3 = arith.constant 0 : index
    %4 = vector.load %arg3[%c0_2, %c0_3] : memref<256x512xbf16, #tpu.memory_space<vmem>>, vector<256x512xbf16>
    %cst = arith.constant dense<0.000000e+00> : vector<16x512xf32>
    %5 = tpu.matmul %3, %4, %cst {dimension_numbers = #tpu.dot_dimension_numbers<[1], [0], [0], [1], [0, 0, 1, 1], [], []>} : vector<16x256xbf16>, vector<256x512xbf16>, vector<16x512xf32> -> vector<16x512xf32>
    %6 = arith.index_cast %arg1 : i32 to index
    %c0_4 = arith.constant 0 : index
    %7 = vector.load %arg4[%6, %c0_4] : memref<1x512xf32, #tpu.memory_space<vmem>>, vector<1x512xf32>
    %8 = vector.broadcast %7 : vector<1x512xf32> to vector<16x512xf32>
    %9 = arith.addf %5, %8 : vector<16x512xf32>
    %10 = vector.extract_strided_slice %9 {offsets = [0, 0], sizes = [16, 256], strides = [1, 1]} : vector<16x512xf32> to vector<16x256xf32>
    %11 = vector.extract_strided_slice %9 {offsets = [0, 256], sizes = [16, 256], strides = [1, 1]} : vector<16x512xf32> to vector<16x256xf32>
    %cst_5 = arith.constant 5.000000e-01 : f32
    %12 = vector.broadcast %cst_5 : f32 to vector<16x256xf32>
    %13 = arith.mulf %12, %11 : vector<16x256xf32>
    %cst_6 = arith.constant 0.797884583 : f32
    %14 = vector.broadcast %cst_6 : f32 to vector<16x256xf32>
    %15 = arith.mulf %14, %11 : vector<16x256xf32>
    %16 = arith.mulf %11, %11 : vector<16x256xf32>
    %cst_7 = arith.constant 4.471500e-02 : f32
    %17 = vector.broadcast %cst_7 : f32 to vector<16x256xf32>
    %18 = arith.mulf %17, %16 : vector<16x256xf32>
    %cst_8 = arith.constant 1.000000e+00 : f32
    %19 = vector.broadcast %cst_8 : f32 to vector<16x256xf32>
    %20 = arith.addf %19, %18 : vector<16x256xf32>
    %21 = arith.mulf %15, %20 : vector<16x256xf32>
    %22 = math.tanh %21 : vector<16x256xf32>
    %cst_9 = arith.constant 1.000000e+00 : f32
    %23 = vector.broadcast %cst_9 : f32 to vector<16x256xf32>
    %24 = arith.addf %23, %22 : vector<16x256xf32>
    %25 = arith.mulf %13, %24 : vector<16x256xf32>
    %26 = arith.mulf %10, %25 : vector<16x256xf32>
    %27 = arith.truncf %26 : vector<16x256xf32> to vector<16x256xbf16>
    %c0_10 = arith.constant 0 : index
    %c0_11 = arith.constant 0 : index
    %28 = vector.load %arg8[%c0_10, %c0_11] : memref<16x256xf32, #tpu.memory_space<vmem>>, vector<16x256xf32>
    %c0_12 = arith.constant 0 : index
    %c0_13 = arith.constant 0 : index
    %29 = vector.load %arg5[%c0_12, %c0_13] : memref<256x256xbf16, #tpu.memory_space<vmem>>, vector<256x256xbf16>
    %cst_14 = arith.constant dense<0.000000e+00> : vector<16x256xf32>
    %30 = tpu.matmul %27, %29, %cst_14 {dimension_numbers = #tpu.dot_dimension_numbers<[1], [0], [0], [1], [0, 0, 1, 1], [], []>} : vector<16x256xbf16>, vector<256x256xbf16>, vector<16x256xf32> -> vector<16x256xf32>
    %31 = arith.addf %28, %30 : vector<16x256xf32>
    %c0_15 = arith.constant 0 : index
    %c0_16 = arith.constant 0 : index
    %32 = vector.load %arg8[%c0_15, %c0_16] : memref<16x256xf32, #tpu.memory_space<vmem>>, vector<16x256xf32>
    tpu.vector_store %arg8[%c0_15, %c0_16], %31 {strides = array<i32>} : memref<16x256xf32, #tpu.memory_space<vmem>>, vector<16x256xf32>,
    %c0_i32_17 = arith.constant 0 : i32
    %33 = arith.cmpi eq, %arg1, %c0_i32_17 : i32
    %34 = arith.extui %33 : i1 to i32
    %c0_i32_18 = arith.constant 0 : i32
    %35 = arith.cmpi ne, %34, %c0_i32_18 : i32
    scf.if %35 {
      %c0_19 = arith.constant 0 : index
      %c0_20 = arith.constant 0 : index
      %36 = vector.load %arg8[%c0_19, %c0_20] : memref<16x256xf32, #tpu.memory_space<vmem>>, vector<16x256xf32>
      %c0_21 = arith.constant 0 : index
      %c0_22 = arith.constant 0 : index
      %37 = vector.load %arg6[%c0_21, %c0_22] : memref<1x256xf32, #tpu.memory_space<vmem>>, vector<1x256xf32>
      %38 = vector.broadcast %37 : vector<1x256xf32> to vector<16x256xf32>
      %39 = arith.addf %36, %38 : vector<16x256xf32>
      %c0_23 = arith.constant 0 : index
      %c0_24 = arith.constant 0 : index
      %40 = vector.load %arg7[%c0_23, %c0_24] : memref<16x256xf32, #tpu.memory_space<vmem>>, vector<16x256xf32>
      tpu.vector_store %arg7[%c0_23, %c0_24], %39 {strides = array<i32>} : memref<16x256xf32, #tpu.memory_space<vmem>>, vector<16x256xf32>,
    } else {
    }
    return
  }
  func.func @transform_0(%arg0: i32, %arg1: i32) -> (i32, i32) {
    %c0_i32 = arith.constant 0 : i32
    %c0_i32_0 = arith.constant 0 : i32
    return %arg0, %c0_i32 : i32, i32
  }
  func.func @transform_1(%arg0: i32, %arg1: i32) -> (i32, i32) {
    %c0_i32 = arith.constant 0 : i32
    %c0_i32_0 = arith.constant 0 : i32
    return %c0_i32, %arg1 : i32, i32
  }
  func.func @transform_2(%arg0: i32, %arg1: i32) -> (i32, i32) {
    %c0_i32 = arith.constant 0 : i32
    %c0_i32_0 = arith.constant 0 : i32
    %c0_i32_1 = arith.constant 0 : i32
    return %c0_i32, %c0_i32_0 : i32, i32
  }
  func.func @transform_3(%arg0: i32, %arg1: i32) -> (i32, i32) {
    %c0_i32 = arith.constant 0 : i32
    %c0_i32_0 = arith.constant 0 : i32
    return %arg1, %c0_i32 : i32, i32
  }
  func.func @transform_4(%arg0: i32, %arg1: i32) -> (i32, i32) {
    %c0_i32 = arith.constant 0 : i32
    %c0_i32_0 = arith.constant 0 : i32
    %c0_i32_1 = arith.constant 0 : i32
    return %c0_i32, %c0_i32_0 : i32, i32
  }
  func.func @transform_5(%arg0: i32, %arg1: i32) -> (i32, i32) {
    %c0_i32 = arith.constant 0 : i32
    %c0_i32_0 = arith.constant 0 : i32
    return %arg0, %c0_i32 : i32, i32
  }
}

</mosaic_0001>

<bundles_post_ra>
// kernel: tpu_custom_call.1
= control target key start
LH: loop header
LB: loop body
LE: loop exit
PB: predicated region body
PF: predicated region fallthrough
CT: control target
= control target key end

     0   :  { %10 = vsyncpa [#allocation4], 0  ;;  %s1694_s0 = inlined_call_operand.hbm [shape: bf16[16,256], index: 0, kind: input, shape index: {}]   ;;  %s1695_s1 = inlined_call_operand.hbm [shape: bf16[256,512], index: 1, kind: input, shape index: {}]   ;;  %s1696_s2 = inlined_call_operand.hbm [shape: f32[1,512], index: 2, kind: input, shape index: {}]   ;;  %s1697_s3 = inlined_call_operand.hbm [shape: bf16[256,256], index: 3, kind: input, shape index: {}]   ;;  %s1698_s4 = inlined_call_operand.vmem [shape: f32[1,256], index: 4, kind: input, shape index: {}]   ;;  %s1699_s5 = inlined_call_operand.hbm [shape: f32[16,256], index: 5, kind: output, shape index: {}]  }
   0x1   :  { %11 = vsyncpa [#allocation7], 0 }
   0x2   :  { %12 = vsyncpa [#allocation10], 0  ;;  %s31_s20 = sshll.u32 %s1695_s1, 4  ;;  %s32_s20 = int_to_ptr.hbm [resolvable:$true] %s31_s20 }
   0x3   :  { %13 = vsyncpa [#allocation5], 0  ;;  %s1589_s21 = smov [#allocation6]   ;;  %s18_s25 = sshll.u32 %s1694_s0, 4  ;;  %s19_s25 = int_to_ptr.hbm [resolvable:$true] %s18_s25 }
   0x4   :  { %s33_s22 = sshll.u32 %s1589_s21, 4  ;;  %s1590_s26 = smov 256   ;;  %s34_s22 = int_to_ptr.vmem [resolvable:$true] %s33_s22 }
   0x5   :  { %s1591_s27 = smov 16   ;;  %s1592_s28 = smov [#allocation3]  }
   0x6   :  { %39 = dma.hbm_to_vmem [thread:$0]  %s32_s20, 8192, %s34_s22, [#allocation7], %s1590_s26, %s1590_s26, %s1591_s27  }
   0x7   :  { %s20_s29 = sshll.u32 %s1592_s28, 4  ;;  %s1593_s1 = smov 128   ;;  %s21_s29 = int_to_ptr.vmem [resolvable:$true] %s20_s29 }
   0x8   :  { %s1594_s30 = smov 8   ;;  %s45_s8 = sshll.u32 %s1696_s2, 4  ;;  %s46_s8 = int_to_ptr.hbm [resolvable:$true] %s45_s8 }
   0x9   :  { %26 = dma.hbm_to_vmem [thread:$0]  %s19_s25, 256, %s21_s29, [#allocation4], %s1593_s1, %s1593_s1, %s1594_s30  }
   0xa   :  { %s1595_s9 = smov [#allocation8]   ;;  %s55_s12 = sshll.u32 %s1697_s3, 4  ;;  %s56_s12 = int_to_ptr.hbm [resolvable:$true] %s55_s12 }
   0xb   :  { %s47_s0 = sshll.u32 %s1595_s9, 4  ;;  %s1596_s13 = smov [#allocation9]   ;;  %s48_s0 = int_to_ptr.vmem [resolvable:$true] %s47_s0 }
   0xc   :  { %50 = dma.hbm_to_vmem [thread:$0]  %s46_s8, 64, %s48_s0, [#allocation7]  }
   0xd   :  { %s57_s14 = sshll.u32 %s1596_s13, 4  ;;  %s58_s14 = int_to_ptr.vmem [resolvable:$true] %s57_s14 }
   0xe   :  { %63 = dma.hbm_to_vmem [thread:$0]  %s56_s12, 4096, %s58_s14, [#allocation10], %s1593_s1, %s1593_s1, %s1594_s30  }
   0xf   :  { %1581 = dma.done.wait [#allocation4], 256  }
  0x10   :  { %1582 = vsyncadd [#allocation4], 4294967040 }
  0x11   :  { %1583 = dma.done.wait [#allocation7], 8256  }
  0x12   :  { %1584 = vsyncadd [#allocation7], 4294959040 }
  0x13   :  { %1585 = dma.done.wait [#allocation10], 4096  }
  0x14   :  { %1586 = vsyncadd [#allocation10], 4294963200  ;;  %v1076_v0 = vld [vmem:[#allocation6 + $0xe0] sm:$0xf]  ;;  %v1378_v1 = vld [vmem:[#allocation6 + $0xec] sm:$0xf0] }
  0x15   :  { %v1204_v2 = vld [vmem:[#allocation6 + $0x1e0] sm:$0xf]  ;;  %v1077_v3 = vor.u32 %v1378_v1, %v1076_v0  ;;  %v1410_v4 = vld [vmem:[#allocation6 + $0x1ec] sm:$0xf0]  ;;  %v1376_v5 = vld [vmem:[#allocation6 + $0xe4] sm:$0xf] }
  0x16   :  { %v1078_v6 = vld [vmem:[#allocation6 + $0xf0] sm:$0xf0]  ;;  %v1205_v7 = vor.u32 %v1410_v4, %v1204_v2  ;;  %v1408_v9 = vld [vmem:[#allocation6 + $0x1e4] sm:$0xf]  ;;  %v1060_v11 = vld [vmem:[#allocation6 + $0xc0] sm:$0xf] }
  0x17   :  { %v1081_v8 = vor.u32 %v1376_v5, %v1078_v6  ;;  %v1206_v10 = vld [vmem:[#allocation6 + $0x1f0] sm:$0xf0]  ;;  %498 = vmatpush.bf16.msra.mxu0 %v1077_v3  ;;  %v1374_v13 = vld [vmem:[#allocation6 + $0xcc] sm:$0xf0]  ;;  %v1188_v14 = vld [vmem:[#allocation6 + $0x1c0] sm:$0xf] }
  0x18   :  { %v1209_v12 = vor.u32 %v1408_v9, %v1206_v10  ;;  %v1406_v15 = vld [vmem:[#allocation6 + $0x1cc] sm:$0xf0]  ;;  %512 = vmatpush.bf16.msra.mxu1 %v1205_v7  ;;  %v1061_v16 = vor.u32 %v1374_v13, %v1060_v11  ;;  %v1372_v18 = vld [vmem:[#allocation6 + $0xc4] sm:$0xf]  ;;  %v1062_v19 = vld [vmem:[#allocation6 + $0xd0] sm:$0xf0] }
  0x19   :  { %526 = vmatpush.bf16.msra.mxu2 %v1081_v8  ;;  %v1189_v17 = vor.u32 %v1406_v15, %v1188_v14  ;;  %v1404_v20 = vld [vmem:[#allocation6 + $0x1c4] sm:$0xf]  ;;  %v1065_v21 = vor.u32 %v1372_v18, %v1062_v19  ;;  %v1190_v22 = vld [vmem:[#allocation6 + $0x1d0] sm:$0xf0]  ;;  %v1044_v23 = vld [vmem:[#allocation6 + $0xa0] sm:$0xf] }
  0x1a   :  { %540 = vmatpush.bf16.msra.mxu3 %v1209_v12  ;;  %v1370_v24 = vld [vmem:[#allocation6 + $0xac] sm:$0xf0]  ;;  %v1193_v25 = vor.u32 %v1404_v20, %v1190_v22  ;;  %v1172_v26 = vld [vmem:[#allocation6 + $0x1a0] sm:$0xf]  ;;  %v1368_v28 = vld [vmem:[#allocation6 + $0xa4] sm:$0xf] }
  0x1b   :  { %v1402_v27 = vld [vmem:[#allocation6 + $0x1ac] sm:$0xf0]  ;;  %499 = vmatpush.bf16.msra.mxu0 %v1061_v16  ;;  %v1045_v29 = vor.u32 %v1370_v24, %v1044_v23  ;;  %v1046_v30 = vld [vmem:[#allocation6 + $0xb0] sm:$0xf0]  ;;  %v1400_v31 = vld [vmem:[#allocation6 + $0x1a4] sm:$0xf] }
  0x1c   :  { %v1174_v32 = vld [vmem:[#allocation6 + $0x1b0] sm:$0xf0]  ;;  %513 = vmatpush.bf16.msra.mxu1 %v1189_v17  ;;  %v1173_v33 = vor.u32 %v1402_v27, %v1172_v26  ;;  %v1049_v34 = vor.u32 %v1368_v28, %v1046_v30  ;;  %v1028_v35 = vld [vmem:[#allocation6 + $0x80] sm:$0xf]  ;;  %v1366_v36 = vld [vmem:[#allocation6 + $0x8c] sm:$0xf0] }
  0x1d   :  { %527 = vmatpush.bf16.msra.mxu2 %v1065_v21  ;;  %v1156_v37 = vld [vmem:[#allocation6 + $0x180] sm:$0xf]  ;;  %v1177_v38 = vor.u32 %v1400_v31, %v1174_v32  ;;  %v1398_v39 = vld [vmem:[#allocation6 + $0x18c] sm:$0xf0]  ;;  %v1364_v40 = vld [vmem:[#allocation6 + $0x84] sm:$0xf]  ;;  %v1029_v44 = vor.u32 %v1366_v36, %v1028_v35 }
  0x1e   :  { %541 = vmatpush.bf16.msra.mxu3 %v1193_v25  ;;  %v1030_v41 = vld [vmem:[#allocation6 + $0x90] sm:$0xf0]  ;;  %v1396_v42 = vld [vmem:[#allocation6 + $0x184] sm:$0xf]  ;;  %v1157_v45 = vor.u32 %v1398_v39, %v1156_v37  ;;  %v1012_v47 = vld [vmem:[#allocation6 + $0x60] sm:$0xf] }
  0x1f   :  { %v1158_v43 = vld [vmem:[#allocation6 + $0x190] sm:$0xf0]  ;;  %500 = vmatpush.bf16.msra.mxu0 %v1045_v29  ;;  %v1033_v46 = vor.u32 %v1364_v40, %v1030_v41  ;;  %v1362_v48 = vld [vmem:[#allocation6 + $0x6c] sm:$0xf0]  ;;  %v1140_v49 = vld [vmem:[#allocation6 + $0x160] sm:$0xf] }
  0x20   :  { %514 = vmatpush.bf16.msra.mxu1 %v1173_v33  ;;  %v1161_v50 = vor.u32 %v1396_v42, %v1158_v43  ;;  %v1394_v51 = vld [vmem:[#allocation6 + $0x16c] sm:$0xf0]  ;;  %v1360_v52 = vld [vmem:[#allocation6 + $0x64] sm:$0xf]  ;;  %v1014_v53 = vld [vmem:[#allocation6 + $0x70] sm:$0xf0]  ;;  %v1013_v56 = vor.u32 %v1362_v48, %v1012_v47 }
  0x21   :  { %528 = vmatpush.bf16.msra.mxu2 %v1049_v34  ;;  %v1392_v54 = vld [vmem:[#allocation6 + $0x164] sm:$0xf]  ;;  %v1142_v55 = vld [vmem:[#allocation6 + $0x170] sm:$0xf0]  ;;  %v1141_v57 = vor.u32 %v1394_v51, %v1140_v49  ;;  %v1017_v58 = vor.u32 %v1360_v52, %v1014_v53  ;;  %v996_v59 = vld [vmem:[#allocation6 + $0x40] sm:$0xf] }
  0x22   :  { %542 = vmatpush.bf16.msra.mxu3 %v1177_v38  ;;  %v1358_v60 = vld [vmem:[#allocation6 + $0x4c] sm:$0xf0]  ;;  %v1124_v61 = vld [vmem:[#allocation6 + $0x140] sm:$0xf]  ;;  %v1145_v62 = vor.u32 %v1392_v54, %v1142_v55  ;;  %v1356_v0 = vld [vmem:[#allocation6 + $0x44] sm:$0xf] }
  0x23   :  { %501 = vmatpush.bf16.msra.mxu0 %v1029_v44  ;;  %v1390_v63 = vld [vmem:[#allocation6 + $0x14c] sm:$0xf0]  ;;  %v998_v1 = vld [vmem:[#allocation6 + $0x50] sm:$0xf0]  ;;  %v1388_v2 = vld [vmem:[#allocation6 + $0x144] sm:$0xf]  ;;  %v997_v4 = vor.u32 %v1358_v60, %v996_v59 }
  0x24   :  { %515 = vmatpush.bf16.msra.mxu1 %v1157_v45  ;;  %v1126_v3 = vld [vmem:[#allocation6 + $0x150] sm:$0xf0]  ;;  %v1125_v5 = vor.u32 %v1390_v63, %v1124_v61  ;;  %v1001_v6 = vor.u32 %v1356_v0, %v998_v1  ;;  %v980_v7 = vld [vmem:[#allocation6 + $0x20] sm:$0xf]  ;;  %v1354_v8 = vld [vmem:[#allocation6 + $0x2c] sm:$0xf0] }
  0x25   :  { %529 = vmatpush.bf16.msra.mxu2 %v1033_v46  ;;  %v1108_v9 = vld [vmem:[#allocation6 + $0x120] sm:$0xf]  ;;  %v1129_v10 = vor.u32 %v1388_v2, %v1126_v3  ;;  %v1386_v11 = vld [vmem:[#allocation6 + $0x12c] sm:$0xf0]  ;;  %v1352_v12 = vld [vmem:[#allocation6 + $0x24] sm:$0xf]  ;;  %v981_v16 = vor.u32 %v1354_v8, %v980_v7 }
  0x26   :  { %543 = vmatpush.bf16.msra.mxu3 %v1161_v50  ;;  %v982_v13 = vld [vmem:[#allocation6 + $0x30] sm:$0xf0]  ;;  %v1384_v14 = vld [vmem:[#allocation6 + $0x124] sm:$0xf]  ;;  %v964_v17 = vld [vmem:[#allocation6] sm:$0xf]  ;;  %v1109_v20 = vor.u32 %v1386_v11, %v1108_v9 }
  0x27   :  { %502 = vmatpush.bf16.msra.mxu0 %v1013_v56  ;;  %v1110_v15 = vld [vmem:[#allocation6 + $0x130] sm:$0xf0]  ;;  %v1350_v18 = vld [vmem:[#allocation6 + $0xc] sm:$0xf0]  ;;  %v1092_v19 = vld [vmem:[#allocation6 + $0x100] sm:$0xf]  ;;  %v985_v21 = vor.u32 %v1352_v12, %v982_v13 }
  0x28   :  { %516 = vmatpush.bf16.msra.mxu1 %v1141_v57  ;;  %v1382_v22 = vld [vmem:[#allocation6 + $0x10c] sm:$0xf0]  ;;  %v1348_v23 = vld [vmem:[#allocation6 + $0x4] sm:$0xf]  ;;  %v966_v24 = vld [vmem:[#allocation6 + $0x10] sm:$0xf0]  ;;  %v1113_v25 = vor.u32 %v1384_v14, %v1110_v15  ;;  %v965_v32 = vor.u32 %v1350_v18, %v964_v17 }
  0x29   :  { %530 = vmatpush.bf16.msra.mxu2 %v1017_v58  ;;  %v1380_v26 = vld [vmem:[#allocation6 + $0x104] sm:$0xf]  ;;  %v1094_v27 = vld [vmem:[#allocation6 + $0x110] sm:$0xf0]  ;;  %v1084_v28 = vld [vmem:[#allocation6 + $0xe8] sm:$0xf]  ;;  %v1093_v36 = vor.u32 %v1382_v22, %v1092_v19  ;;  %v969_v37 = vor.u32 %v1348_v23, %v966_v24 }
  0x2a   :  { %544 = vmatpush.bf16.msra.mxu3 %v1145_v62  ;;  %v1379_v29 = vld [vmem:[#allocation6 + $0xf4] sm:$0xf0]  ;;  %v1212_v30 = vld [vmem:[#allocation6 + $0x1e8] sm:$0xf]  ;;  %v1377_v33 = vld [vmem:[#allocation6 + $0xec] sm:$0xf]  ;;  %v1097_v41 = vor.u32 %v1380_v26, %v1094_v27 }
  0x2b   :  { %503 = vmatpush.bf16.msra.mxu0 %v997_v4  ;;  %v1411_v31 = vld [vmem:[#allocation6 + $0x1f4] sm:$0xf0]  ;;  %v1086_v34 = vld [vmem:[#allocation6 + $0xf8] sm:$0xf0]  ;;  %v1409_v35 = vld [vmem:[#allocation6 + $0x1ec] sm:$0xf]  ;;  %v1085_v42 = vor.u32 %v1379_v29, %v1084_v28 }
  0x2c   :  { %517 = vmatpush.bf16.msra.mxu1 %v1125_v5  ;;  %v1214_v38 = vld [vmem:[#allocation6 + $0x1f8] sm:$0xf0]  ;;  %v956_v39 = vld [vmem:[#allocation3] sm:$0xf]  ;;  %v1347_v40 = vld [vmem:[#allocation3 + $0x4] sm:$0xf0]  ;;  %v1213_v45 = vor.u32 %v1411_v31, %v1212_v30  ;;  %v1089_v46 = vor.u32 %v1377_v33, %v1086_v34 }
  0x2d   :  { %531 = vmatpush.bf16.msra.mxu2 %v1001_v6  ;;  %v1068_v43 = vld [vmem:[#allocation6 + $0xc8] sm:$0xf]  ;;  %v1375_v44 = vld [vmem:[#allocation6 + $0xd4] sm:$0xf0]  ;;  %v1346_v48 = vld [vmem:[#allocation3 + $0x4] sm:$0xf]  ;;  %v1217_v50 = vor.u32 %v1409_v35, %v1214_v38  ;;  %v1643_v54 = vor.u32 %v1347_v40, %v956_v39 }
  0x2e   :  { %545 = vmatpush.bf16.msra.mxu3 %v1129_v10  ;;  %v1196_v47 = vld [vmem:[#allocation6 + $0x1c8] sm:$0xf]  ;;  %v958_v49 = vld [vmem:[#allocation3 + $0x8] sm:$0xf0]  ;;  %v1407_v51 = vld [vmem:[#allocation6 + $0x1d4] sm:$0xf0]  ;;  %v1069_v58 = vor.u32 %v1375_v44, %v1068_v43 }
  0x2f   :  { %504 = vmatpush.bf16.msra.mxu0 %v981_v16  ;;  %v1373_v52 = vld [vmem:[#allocation6 + $0xcc] sm:$0xf]  ;;  %v1070_v53 = vld [vmem:[#allocation6 + $0xd8] sm:$0xf0]  ;;  %v1645_v57 = vor.u32 %v1346_v48, %v958_v49  ;;  %v1197_v59 = vor.u32 %v1407_v51, %v1196_v47  ;;  %v1052_v61 = vld [vmem:[#allocation6 + $0xa8] sm:$0xf] }
  0x30   :  { %518 = vmatpush.bf16.msra.mxu1 %v1109_v20  ;;  %v1405_v55 = vld [vmem:[#allocation6 + $0x1cc] sm:$0xf]  ;;  %v1198_v56 = vld [vmem:[#allocation6 + $0x1d8] sm:$0xf0]  ;;  %v1073_v60 = vor.u32 %v1373_v52, %v1070_v53  ;;  %v1371_v62 = vld [vmem:[#allocation6 + $0xb4] sm:$0xf0] }
  0x31   :  { %532 = vmatpush.bf16.msra.mxu2 %v985_v21  ;;  %v1180_v63 = vld [vmem:[#allocation6 + $0x1a8] sm:$0xf]  ;;  %v1201_v0 = vor.u32 %v1405_v55, %v1198_v56  ;;  %v1403_v1 = vld [vmem:[#allocation6 + $0x1b4] sm:$0xf0]  ;;  %v1369_v2 = vld [vmem:[#allocation6 + $0xac] sm:$0xf]  ;;  %v1053_v6 = vor.u32 %v1371_v62, %v1052_v61 }
  0x32   :  { %546 = vmatpush.bf16.msra.mxu3 %v1113_v25  ;;  %v1054_v3 = vld [vmem:[#allocation6 + $0xb8] sm:$0xf0]  ;;  %v1401_v4 = vld [vmem:[#allocation6 + $0x1ac] sm:$0xf]  ;;  %v1181_v7 = vor.u32 %v1403_v1, %v1180_v63  ;;  %v1036_v9 = vld [vmem:[#allocation6 + $0x88] sm:$0xf] }
  0x33   :  { %505 = vmatpush.bf16.msra.mxu0 %v965_v32  ;;  %v1182_v5 = vld [vmem:[#allocation6 + $0x1b8] sm:$0xf0]  ;;  %v1057_v8 = vor.u32 %v1369_v2, %v1054_v3  ;;  %v1367_v10 = vld [vmem:[#allocation6 + $0x94] sm:$0xf0]  ;;  %v1164_v11 = vld [vmem:[#allocation6 + $0x188] sm:$0xf] }
  0x34   :  { %519 = vmatpush.bf16.msra.mxu1 %v1093_v36  ;;  %v1185_v12 = vor.u32 %v1401_v4, %v1182_v5  ;;  %v1399_v13 = vld [vmem:[#allocation6 + $0x194] sm:$0xf0]  ;;  %v1365_v14 = vld [vmem:[#allocation6 + $0x8c] sm:$0xf]  ;;  %v1038_v15 = vld [vmem:[#allocation6 + $0x98] sm:$0xf0]  ;;  %v1037_v18 = vor.u32 %v1367_v10, %v1036_v9 }
  0x35   :  { %533 = vmatpush.bf16.msra.mxu2 %v969_v37  ;;  %v1397_v16 = vld [vmem:[#allocation6 + $0x18c] sm:$0xf]  ;;  %v1166_v17 = vld [vmem:[#allocation6 + $0x198] sm:$0xf0]  ;;  %v1165_v19 = vor.u32 %v1399_v13, %v1164_v11  ;;  %v1041_v20 = vor.u32 %v1365_v14, %v1038_v15  ;;  %v1020_v21 = vld [vmem:[#allocation6 + $0x68] sm:$0xf] }
  0x36   :  { %547 = vmatpush.bf16.msra.mxu3 %v1097_v41  ;;  %506 = vmatmul.bf16.vlgmr.msra.gmra.mxu0 %v1643_v54  ;;  %v1363_v22 = vld [vmem:[#allocation6 + $0x74] sm:$0xf0]  ;;  %v1148_v23 = vld [vmem:[#allocation6 + $0x168] sm:$0xf]  ;;  %v1169_v24 = vor.u32 %v1397_v16, %v1166_v17  ;;  %v1361_v26 = vld [vmem:[#allocation6 + $0x6c] sm:$0xf] }
  0x37   :  { %554 = vmatpush.bf16.msrb.mxu0 %v1085_v42  ;;  %520 = vmatmul.bf16.vlgmr.msra.gmra.mxu1 %v1645_v57  ;;  %v1395_v25 = vld [vmem:[#allocation6 + $0x174] sm:$0xf0]  ;;  %v1022_v27 = vld [vmem:[#allocation6 + $0x78] sm:$0xf0]  ;;  %v1393_v28 = vld [vmem:[#allocation6 + $0x16c] sm:$0xf]  ;;  %v1021_v30 = vor.u32 %v1363_v22, %v1020_v21 }
  0x38   :  { %568 = vmatpush.bf16.msrb.mxu1 %v1213_v45  ;;  %534 = vmatmul.bf16.vlgmr.msra.gmra.mxu2 %v1643_v54  ;;  %v1150_v29 = vld [vmem:[#allocation6 + $0x178] sm:$0xf0]  ;;  %v1149_v31 = vor.u32 %v1395_v25, %v1148_v23  ;;  %v1025_v32 = vor.u32 %v1361_v26, %v1022_v27  ;;  %v1004_v33 = vld [vmem:[#allocation6 + $0x48] sm:$0xf]  ;;  %v1359_v34 = vld [vmem:[#allocation6 + $0x54] sm:$0xf0] }
  0x39   :  { %582 = vmatpush.bf16.msrb.mxu2 %v1089_v46  ;;  %548 = vmatmul.bf16.vlgmr.msra.gmra.mxu3 %v1645_v57  ;;  %v1132_v35 = vld [vmem:[#allocation6 + $0x148] sm:$0xf]  ;;  %v1153_v36 = vor.u32 %v1393_v28, %v1150_v29  ;;  %v1391_v37 = vld [vmem:[#allocation6 + $0x154] sm:$0xf0]  ;;  %v1357_v38 = vld [vmem:[#allocation6 + $0x4c] sm:$0xf]  ;;  %v1005_v42 = vor.u32 %v1359_v34, %v1004_v33 }
  0x3a   :  { %596 = vmatpush.bf16.msrb.mxu3 %v1217_v50  ;;  %v1006_v39 = vld [vmem:[#allocation6 + $0x58] sm:$0xf0]  ;;  %v1389_v40 = vld [vmem:[#allocation6 + $0x14c] sm:$0xf]  ;;  %v1133_v43 = vor.u32 %v1391_v37, %v1132_v35  ;;  %v988_v45 = vld [vmem:[#allocation6 + $0x28] sm:$0xf] }
  0x3b   :  { %555 = vmatpush.bf16.msrb.mxu0 %v1069_v58  ;;  %v1134_v41 = vld [vmem:[#allocation6 + $0x158] sm:$0xf0]  ;;  %v1009_v44 = vor.u32 %v1357_v38, %v1006_v39  ;;  %v1355_v46 = vld [vmem:[#allocation6 + $0x34] sm:$0xf0]  ;;  %v1116_v47 = vld [vmem:[#allocation6 + $0x128] sm:$0xf] }
  0x3c   :  { %569 = vmatpush.bf16.msrb.mxu1 %v1197_v59  ;;  %v1137_v48 = vor.u32 %v1389_v40, %v1134_v41  ;;  %v1387_v49 = vld [vmem:[#allocation6 + $0x134] sm:$0xf0]  ;;  %v1353_v50 = vld [vmem:[#allocation6 + $0x2c] sm:$0xf]  ;;  %v990_v51 = vld [vmem:[#allocation6 + $0x38] sm:$0xf0]  ;;  %v989_v55 = vor.u32 %v1355_v46, %v988_v45 }
  0x3d   :  { %583 = vmatpush.bf16.msrb.mxu2 %v1073_v60  ;;  %v1385_v52 = vld [vmem:[#allocation6 + $0x12c] sm:$0xf]  ;;  %v1118_v53 = vld [vmem:[#allocation6 + $0x138] sm:$0xf0]  ;;  %v1117_v56 = vor.u32 %v1387_v49, %v1116_v47  ;;  %v993_v58 = vor.u32 %v1353_v50, %v990_v51  ;;  %v972_v59 = vld [vmem:[#allocation6 + $0x8] sm:$0xf] }
  0x3e   :  { %597 = vmatpush.bf16.msrb.mxu3 %v1201_v0  ;;  %v1351_v60 = vld [vmem:[#allocation6 + $0x14] sm:$0xf0]  ;;  %v1100_v61 = vld [vmem:[#allocation6 + $0x108] sm:$0xf]  ;;  %v1121_v62 = vor.u32 %v1385_v52, %v1118_v53  ;;  %v1349_v0 = vld [vmem:[#allocation6 + $0xc] sm:$0xf] }
  0x3f   :  { %556 = vmatpush.bf16.msrb.mxu0 %v1053_v6  ;;  %v1383_v63 = vld [vmem:[#allocation6 + $0x114] sm:$0xf0]  ;;  %v974_v1 = vld [vmem:[#allocation6 + $0x18] sm:$0xf0]  ;;  %v1381_v2 = vld [vmem:[#allocation6 + $0x10c] sm:$0xf]  ;;  %v973_v4 = vor.u32 %v1351_v60, %v972_v59 }
  0x40   :  { %570 = vmatpush.bf16.msrb.mxu1 %v1181_v7  ;;  %v1102_v3 = vld [vmem:[#allocation6 + $0x118] sm:$0xf0]  ;;  %v1101_v5 = vor.u32 %v1383_v63, %v1100_v61  ;;  %v977_v6 = vor.u32 %v1349_v0, %v974_v1  ;;  %v1426_v10 = vld [vmem:[#allocation9 + $0x74] sm:$0xf]  ;;  %v1268_v14 = vld [vmem:[#allocation9 + $0x60] sm:$0xf] }
  0x41   :  { %584 = vmatpush.bf16.msrb.mxu2 %v1057_v8  ;;  %v1105_v7 = vor.u32 %v1381_v2, %v1102_v3  ;;  %v1276_v8 = vld [vmem:[#allocation9 + $0x70] sm:$0xf]  ;;  %v1427_v9 = vld [vmem:[#allocation9 + $0x74] sm:$0xf0]  ;;  %v1425_v15 = vld [vmem:[#allocation9 + $0x64] sm:$0xf0] }
  0x42   :  { %598 = vmatpush.bf16.msrb.mxu3 %v1185_v12  ;;  %v1277_v11 = vor.u32 %v1427_v9, %v1276_v8  ;;  %v1278_v12 = vld [vmem:[#allocation9 + $0x78] sm:$0xf0]  ;;  %v1424_v16 = vld [vmem:[#allocation9 + $0x64] sm:$0xf]  ;;  %v1269_v17 = vor.u32 %v1425_v15, %v1268_v14  ;;  %v1443_v21 = vld [vmem:[#allocation9 + $0xf4] sm:$0xf0] }
  0x43   :  { %557 = vmatpush.bf16.msrb.mxu0 %v1037_v18  ;;  %v1281_v13 = vor.u32 %v1426_v10, %v1278_v12  ;;  %v1270_v18 = vld [vmem:[#allocation9 + $0x68] sm:$0xf0]  ;;  %v1442_v22 = vld [vmem:[#allocation9 + $0xf4] sm:$0xf]  ;;  %v1423_v25 = vld [vmem:[#allocation9 + $0x54] sm:$0xf0] }
  0x44   :  { %571 = vmatpush.bf16.msrb.mxu1 %v1165_v19  ;;  %v1273_v19 = vor.u32 %v1424_v16, %v1270_v18  ;;  %v1422_v26 = vld [vmem:[#allocation9 + $0x54] sm:$0xf]  ;;  %v1262_v29 = vld [vmem:[#allocation9 + $0x58] sm:$0xf0]  ;;  %v1441_v33 = vld [vmem:[#allocation9 + $0xe4] sm:$0xf0] }
  0x45   :  { %585 = vmatpush.bf16.msrb.mxu2 %v1041_v20  ;;  %v1340_v20 = vld [vmem:[#allocation9 + $0xf0] sm:$0xf]  ;;  %v1440_v34 = vld [vmem:[#allocation9 + $0xe4] sm:$0xf]  ;;  %v1252_v38 = vld [vmem:[#allocation9 + $0x40] sm:$0xf] }
  0x46   :  { %599 = vmatpush.bf16.msrb.mxu3 %v1169_v24  ;;  %v1260_v24 = vld [vmem:[#allocation9 + $0x50] sm:$0xf]  ;;  %v1421_v39 = vld [vmem:[#allocation9 + $0x44] sm:$0xf0]  ;;  %v1420_v40 = vld [vmem:[#allocation9 + $0x44] sm:$0xf] }
  0x47   :  { %558 = vmatpush.bf16.msrb.mxu0 %v1021_v30  ;;  %v1261_v28 = vor.u32 %v1423_v25, %v1260_v24  ;;  %v1253_v41 = vor.u32 %v1421_v39, %v1252_v38  ;;  %v1439_v45 = vld [vmem:[#allocation9 + $0xd4] sm:$0xf0]  ;;  %v1438_v46 = vld [vmem:[#allocation9 + $0xd4] sm:$0xf]  ;;  %v1244_v50 = vld [vmem:[#allocation9 + $0x30] sm:$0xf] }
  0x48   :  { %572 = vmatpush.bf16.msrb.mxu1 %v1149_v31  ;;  %v1265_v31 = vor.u32 %v1422_v26, %v1262_v29  ;;  %v1419_v51 = vld [vmem:[#allocation9 + $0x34] sm:$0xf0]  ;;  %v1418_v52 = vld [vmem:[#allocation9 + $0x34] sm:$0xf]  ;;  %v1316_v60 = vld [vmem:[#allocation9 + $0xc0] sm:$0xf] }
  0x49   :  { %586 = vmatpush.bf16.msrb.mxu2 %v1025_v32  ;;  %v1332_v32 = vld [vmem:[#allocation9 + $0xe0] sm:$0xf]  ;;  %v1437_v61 = vld [vmem:[#allocation9 + $0xc4] sm:$0xf0]  ;;  %v1318_v1 = vld [vmem:[#allocation9 + $0xc8] sm:$0xf0] }
  0x4a   :  { %600 = vmatpush.bf16.msrb.mxu3 %v1153_v36  ;;  %v1333_v35 = vor.u32 %v1441_v33, %v1332_v32  ;;  %v1334_v36 = vld [vmem:[#allocation9 + $0xe8] sm:$0xf0]  ;;  %v1317_v0 = vor.u32 %v1437_v61, %v1316_v60  ;;  %v1308_v10 = vld [vmem:[#allocation9 + $0xb0] sm:$0xf]  ;;  %v1434_v12 = vld [vmem:[#allocation9 + $0xb4] sm:$0xf] }
  0x4b   :  { %559 = vmatpush.bf16.msrb.mxu0 %v1005_v42  ;;  %v1337_v37 = vor.u32 %v1440_v34, %v1334_v36  ;;  %v1254_v42 = vld [vmem:[#allocation9 + $0x48] sm:$0xf0]  ;;  %v1310_v15 = vld [vmem:[#allocation9 + $0xb8] sm:$0xf0]  ;;  %v1415_v18 = vld [vmem:[#allocation9 + $0x14] sm:$0xf0] }
  0x4c   :  { %573 = vmatpush.bf16.msrb.mxu1 %v1133_v43  ;;  %v1257_v43 = vor.u32 %v1420_v40, %v1254_v42  ;;  %v1238_v8 = vld [vmem:[#allocation9 + $0x28] sm:$0xf0]  ;;  %v1313_v16 = vor.u32 %v1434_v12, %v1310_v15  ;;  %v1432_v24 = vld [vmem:[#allocation9 + $0xa4] sm:$0xf]  ;;  %v1220_v33 = vld [vmem:[#allocation9] sm:$0xf] }
  0x4d   :  { %587 = vmatpush.bf16.msrb.mxu2 %v1009_v44  ;;  %v1324_v44 = vld [vmem:[#allocation9 + $0xd0] sm:$0xf]  ;;  %v1413_v34 = vld [vmem:[#allocation9 + $0x4] sm:$0xf0]  ;;  %v1222_v39 = vld [vmem:[#allocation9 + $0x8] sm:$0xf0] }
  0x4e   :  { %601 = vmatpush.bf16.msrb.mxu3 %v1137_v48  ;;  %v1325_v47 = vor.u32 %v1439_v45, %v1324_v44  ;;  %v1326_v48 = vld [vmem:[#allocation9 + $0xd8] sm:$0xf0]  ;;  %v1221_v38 = vor.u32 %v1413_v34, %v1220_v33  ;;  %v1431_v42 = vld [vmem:[#allocation9 + $0x94] sm:$0xf0]  ;;  %v1286_v61 = vld [vmem:[#allocation9 + $0x88] sm:$0xf0] }
  0x4f   :  { %560 = vmatpush.bf16.msrb.mxu0 %v989_v55  ;;  %v1329_v49 = vor.u32 %v1438_v46, %v1326_v48  ;;  %v1245_v55 = vor.u32 %v1419_v51, %v1244_v50  ;;  %v1294_v46 = vld [vmem:[#allocation9 + $0x98] sm:$0xf0]  ;;  %v1284_v50 = vld [vmem:[#allocation9 + $0x80] sm:$0xf]  ;;  %v1429_v51 = vld [vmem:[#allocation9 + $0x84] sm:$0xf0] }
  0x50   :  { %574 = vmatpush.bf16.msrb.mxu1 %v1117_v56  ;;  %v1246_v56 = vld [vmem:[#allocation9 + $0x38] sm:$0xf0]  ;;  %v1285_v60 = vor.u32 %v1429_v51, %v1284_v50  ;;  %s939_s18 = sshll.u32 %s1699_s5, 4  ;;  %s940_s18 = int_to_ptr.hbm [resolvable:$true] %s939_s18 }
  0x51   :  { %588 = vmatpush.bf16.msrb.mxu2 %v993_v58  ;;  %v1249_v59 = vor.u32 %v1418_v52, %v1246_v56  ;;  %v1428_v52 = vld [vmem:[#allocation9 + $0x84] sm:$0xf] }
  0x52   :  { %602 = vmatpush.bf16.msrb.mxu3 %v1121_v62  ;;  %v1436_v62 = vld [vmem:[#allocation9 + $0xc4] sm:$0xf] }
  0x53   :  { %561 = vmatpush.bf16.msrb.mxu0 %v973_v4  ;;  %v1321_v3 = vor.u32 %v1436_v62, %v1318_v1  ;;  %v1236_v4 = vld [vmem:[#allocation9 + $0x20] sm:$0xf] }
  0x54   :  { %575 = vmatpush.bf16.msrb.mxu1 %v1101_v5  ;;  %v1417_v5 = vld [vmem:[#allocation9 + $0x24] sm:$0xf0] }
  0x55   :  { %589 = vmatpush.bf16.msrb.mxu2 %v977_v6  ;;  %v1416_v6 = vld [vmem:[#allocation9 + $0x24] sm:$0xf] }
  0x56   :  { %603 = vmatpush.bf16.msrb.mxu3 %v1105_v7  ;;  %562 = vmatmul.bf16.vlgmr.msrb.gmra.mxu0 %v1643_v54  ;;  %v1237_v7 = vor.u32 %v1417_v5, %v1236_v4  ;;  %v1241_v9 = vor.u32 %v1416_v6, %v1238_v8 }
  0x57   :  { %576 = vmatmul.bf16.vlgmr.msrb.gmra.mxu1 %v1645_v57  ;;  %848 = vmatpush.bf16.msra.mxu0 %v1277_v11  ;;  %v1435_v11 = vld [vmem:[#allocation9 + $0xb4] sm:$0xf0] }
  0x58   :  { %590 = vmatmul.bf16.vlgmr.msrb.gmra.mxu2 %v1643_v54  ;;  %v1341_v54 = vor.u32 %v1443_v21, %v1340_v20  ;;  %v1309_v14 = vor.u32 %v1435_v11, %v1308_v10 }
  0x59   :  { %604 = vmatmul.bf16.vlgmr.msrb.gmra.mxu3 %v1645_v57  ;;  %876 = vmatpush.bf16.msra.mxu2 %v1281_v13  ;;  %v1342_v57 = vld [vmem:[#allocation9 + $0xf8] sm:$0xf0] }
  0x5a   :  { %v1345_v23 = vor.u32 %v1442_v22, %v1342_v57  ;;  %862 = vmatpush.bf16.msra.mxu1 %v1341_v54  ;;  %v1667_v13 = vld [vmem:[#allocation8] sm:$0xf]  ;;  %v1300_v57 = vld [vmem:[#allocation9 + $0xa0] sm:$0xf] }
  0x5b   :  { %849 = vmatpush.bf16.msra.mxu0 %v1269_v17  ;;  %v1228_v17 = vld [vmem:[#allocation9 + $0x10] sm:$0xf]  ;;  %v162_v20 = vperm.slane %v1667_v13, 2  ;;  %v1230_v22 = vld [vmem:[#allocation9 + $0x18] sm:$0xf0] }
  0x5c   :  { %890 = vmatpush.bf16.msra.mxu3 %v1345_v23  ;;  %v1229_v21 = vor.u32 %v1415_v18, %v1228_v17  ;;  %v1433_v23 = vld [vmem:[#allocation9 + $0xa4] sm:$0xf0] }
  0x5d   :  { %877 = vmatpush.bf16.msra.mxu2 %v1273_v19  ;;  %v1414_v19 = vld [vmem:[#allocation9 + $0x14] sm:$0xf]  ;;  %v1301_v26 = vor.u32 %v1433_v23, %v1300_v57 }
  0x5e   :  { %863 = vmatpush.bf16.msra.mxu1 %v1333_v35  ;;  %v1233_v54 = vor.u32 %v1414_v19, %v1230_v22  ;;  %v1412_v35 = vld [vmem:[#allocation9 + $0x4] sm:$0xf] }
  0x5f   :  { %850 = vmatpush.bf16.msra.mxu0 %v1261_v28  ;;  %v1302_v28 = vld [vmem:[#allocation9 + $0xa8] sm:$0xf0]  ;;  %v1225_v40 = vor.u32 %v1412_v35, %v1222_v39 }
  0x60   :  { %891 = vmatpush.bf16.msra.mxu3 %v1337_v37  ;;  %v1305_v32 = vor.u32 %v1432_v24, %v1302_v28 }
  0x61   :  { %878 = vmatpush.bf16.msra.mxu2 %v1265_v31 }
  0x62   :  { %864 = vmatpush.bf16.msra.mxu1 %v1325_v47  ;;  %v163_v47 = vperm.slane %v1667_v13, 3 }
  0x63   :  { %851 = vmatpush.bf16.msra.mxu0 %v1253_v41  ;;  %v1292_v41 = vld [vmem:[#allocation9 + $0x90] sm:$0xf] }
  0x64   :  { %892 = vmatpush.bf16.msra.mxu3 %v1329_v49  ;;  %v1293_v45 = vor.u32 %v1431_v42, %v1292_v41 }
  0x65   :  { %879 = vmatpush.bf16.msra.mxu2 %v1257_v43  ;;  %v1430_v43 = vld [vmem:[#allocation9 + $0x94] sm:$0xf] }
  0x66   :  { %865 = vmatpush.bf16.msra.mxu1 %v1317_v0  ;;  %v1297_v48 = vor.u32 %v1430_v43, %v1294_v46  ;;  %v161_v43 = vperm.slane %v1667_v13, 1 }
  0x67   :  { %852 = vmatpush.bf16.msra.mxu0 %v1245_v55 }
  0x68   :  { %893 = vmatpush.bf16.msra.mxu3 %v1321_v3  ;;  %v1289_v3 = vor.u32 %v1428_v52, %v1286_v61 }
  0x69   :  { %880 = vmatpush.bf16.msra.mxu2 %v1249_v59 }
  0x6a   :  { %866 = vmatpush.bf16.msra.mxu1 %v1309_v14 }
  0x6b   :  { %853 = vmatpush.bf16.msra.mxu0 %v1237_v7 }
  0x6c   :  { %894 = vmatpush.bf16.msra.mxu3 %v1313_v16 }
  0x6d   :  { %881 = vmatpush.bf16.msra.mxu2 %v1241_v9 }
  0x6e   :  { %867 = vmatpush.bf16.msra.mxu1 %v1301_v26  ;;  %v160_v26 = vperm.slane %v1667_v13, 0 }
  0x6f   :  { %854 = vmatpush.bf16.msra.mxu0 %v1229_v21 }
  0x70   :  { %895 = vmatpush.bf16.msra.mxu3 %v1305_v32 }
  0x71   :  { %882 = vmatpush.bf16.msra.mxu2 %v1233_v54 }
  0x72   :  { %868 = vmatpush.bf16.msra.mxu1 %v1293_v45 }
  0x73   :  { %855 = vmatpush.bf16.msra.mxu0 %v1221_v38 }
  0x74   :  { %896 = vmatpush.bf16.msra.mxu3 %v1297_v48 }
  0x75   :  { %883 = vmatpush.bf16.msra.mxu2 %v1225_v40 }
  0x76   :  { %869 = vmatpush.bf16.msra.mxu1 %v1285_v60 }
  0x78   :  { %897 = vmatpush.bf16.msra.mxu3 %v1289_v3 }
  0xb3   :  { %v1657_v30 = vpop.f32.mrf.mxu0 }
  0xb4   :  { %v1655_v27 = vpop.f32.mrf.mxu1  ;;  %v508_v34 = vadd.f32 %v1657_v30, %v160_v26 }
  0xb6   :  { %v522_v45 = vadd.f32 %v1655_v27, %v508_v34 }
  0xbb   :  { %v1659_v53 = vpop.f32.mrf.mxu2  ;;  %v1665_v2 = vpop.f32.mrf.mxu0 }
  0xbc   :  { %v1661_v58 = vpop.f32.mrf.mxu3  ;;  %v1663_v63 = vpop.f32.mrf.mxu1  ;;  %v510_v35 = vadd.f32 %v1665_v2, %v160_v26  ;;  %v536_v2 = vadd.f32 %v1659_v53, %v161_v43  ;;  %v919_v53 = vld [vmem:[%s1698_s4] sm:$0x3]  ;;  %s1597_s4 = smov [#allocation11]  }
  0xbd   :  { %s937_s15 = sshll.u32 %s1597_s4, 4  ;;  %s938_s15 = int_to_ptr.vmem [resolvable:$true] %s937_s15 }
  0xbe   :  { %v524_v46 = vadd.f32 %v1663_v63, %v510_v35  ;;  %v550_v27 = vadd.f32 %v1661_v58, %v536_v2  ;;  %v922_v58 = vperm.slane %v919_v53, 1 }
  0xc3   :  { %v1670_v25 = vpop.f32.mrf.mxu2 }
  0xc4   :  { %v1672_v29 = vpop.f32.mrf.mxu3 }
  0xd3   :  { %v563_v31 = vpop.f32.mrf.mxu0 }
  0xd4   :  { %v564_v36 = vadd.f32 %v563_v31, %v162_v20  ;;  %v577_v37 = vpop.f32.mrf.mxu1 }
  0xd6   :  { %v578_v44 = vadd.f32 %v577_v37, %v564_v36 }
  0xd8   :  { %v618_v49 = vmul.f32 %v578_v44, %v578_v44  ;;  %v614_v55 = vmul.f32 0.7978846, %v578_v44  ;;  %v610_v36 = vmul.f32 0.5, %v578_v44  ;;  %v538_v44 = vadd.f32 %v1670_v25, %v161_v43 }
  0xda   :  { %v622_v56 = vmul.f32 0.044715, %v618_v49  ;;  %v552_v63 = vadd.f32 %v1672_v29, %v538_v44 }
  0xdb   :  { %v591_v59 = vpop.f32.mrf.mxu2  ;;  %v565_v1 = vpop.f32.mrf.mxu0 }
  0xdc   :  { %v592_v62 = vadd.f32 %v591_v59, %v163_v47  ;;  %v605_v0 = vpop.f32.mrf.mxu3  ;;  %v626_v4 = vadd.f32 1.0, %v622_v56  ;;  %v566_v5 = vadd.f32 %v565_v1, %v162_v20  ;;  %v579_v7 = vpop.f32.mrf.mxu1 }
  0xde   :  { %v606_v6 = vadd.f32 %v605_v0, %v592_v62  ;;  %v630_v8 = vmul.f32 %v626_v4, %v614_v55  ;;  %v580_v9 = vadd.f32 %v579_v7, %v566_v5  ;;  %v921_v0 = vperm.slane %v919_v53, 0 }
  0xe0   :  { %v619_v10 = vmul.f32 %v606_v6, %v606_v6  ;;  %v620_v11 = vmul.f32 %v580_v9, %v580_v9  ;;  %1453 = vtanh.f32 %v630_v8  ;;  %v615_v18 = vmul.f32 0.7978846, %v606_v6 }
  0xe1   :  { %v616_v19 = vmul.f32 0.7978846, %v580_v9  ;;  %v612_v40 = vmul.f32 0.5, %v580_v9  ;;  %v611_v50 = vmul.f32 0.5, %v606_v6 }
  0xe2   :  { %v623_v12 = vmul.f32 0.044715, %v619_v10  ;;  %v624_v14 = vmul.f32 0.044715, %v620_v11 }
  0xe3   :  { %v593_v15 = vpop.f32.mrf.mxu2 }
  0xe4   :  { %v627_v16 = vadd.f32 1.0, %v623_v12  ;;  %v594_v17 = vadd.f32 %v593_v15, %v163_v47  ;;  %v628_v21 = vadd.f32 1.0, %v624_v14  ;;  %v607_v22 = vpop.f32.mrf.mxu3 }
  0xe6   :  { %v608_v54 = vadd.f32 %v607_v22, %v594_v17  ;;  %v631_v20 = vmul.f32 %v627_v16, %v615_v18  ;;  %v632_v57 = vmul.f32 %v628_v21, %v616_v19  ;;  %v1454_v23 = vpop.eup %1453 }
  0xe7   :  { %v638_v31 = vadd.f32 1.0, %v1454_v23 }
  0xe8   :  { %1455 = vtanh.f32 %v632_v57  ;;  %v621_v24 = vmul.f32 %v608_v54, %v608_v54  ;;  %v617_v32 = vmul.f32 0.7978846, %v608_v54  ;;  %v613_v56 = vmul.f32 0.5, %v608_v54 }
  0xe9   :  { %1457 = vtanh.f32 %v631_v20  ;;  %v642_v39 = vmul.f32 %v638_v31, %v610_v36 }
  0xea   :  { %v625_v28 = vmul.f32 0.044715, %v621_v24 }
  0xeb   :  { %v646_v48 = vmul.f32 %v642_v39, %v522_v45 }
  0xec   :  { %v629_v33 = vadd.f32 1.0, %v625_v28 }
  0xee   :  { %v1456_v37 = vpop.eup %1455  ;;  %v633_v38 = vmul.f32 %v629_v33, %v617_v32 }
  0xef   :  { %v640_v41 = vadd.f32 1.0, %v1456_v37  ;;  %v1458_v42 = vpop.eup %1457 }
  0xf0   :  { %1459 = vtanh.f32 %v633_v38  ;;  %v639_v49 = vadd.f32 1.0, %v1458_v42 }
  0xf1   :  { %v644_v47 = vmul.f32 %v640_v41, %v612_v40 }
  0xf2   :  { %v643_v55 = vmul.f32 %v639_v49, %v611_v50 }
  0xf3   :  { %v648_v30 = vmul.f32 %v644_v47, %v524_v46 }
  0xf4   :  { %v647_v60 = vmul.f32 %v643_v55, %v550_v27 }
  0xf5   :  { %v650_v51 = vpack.c.bf16 %v648_v30, %v646_v48 }
  0xf6   :  { %v1460_v52 = vpop.eup %1459 }
  0xf7   :  { %v641_v59 = vadd.f32 1.0, %v1460_v52  ;;  %856 = vmatmul.bf16.vlgmr.msra.gmra.mxu0 %v650_v51  ;;  %884 = vmatmul.bf16.vlgmr.msra.gmra.mxu2 %v650_v51 }
  0xf9   :  { %v645_v13 = vmul.f32 %v641_v59, %v613_v56 }
  0xfb   :  { %v649_v61 = vmul.f32 %v645_v13, %v552_v63 }
  0xfd   :  { %v651_v62 = vpack.c.bf16 %v649_v61, %v647_v60 }
  0xff   :  { %870 = vmatmul.bf16.vlgmr.msra.gmra.mxu1 %v651_v62  ;;  %898 = vmatmul.bf16.vlgmr.msra.gmra.mxu3 %v651_v62 }
 0x174   :  { %v857_v25 = vpop.f32.mrf.mxu0 }
 0x17a   :  { %v885_v5 = vpop.f32.mrf.mxu2 }
 0x17c   :  { %v871_v1 = vpop.f32.mrf.mxu1  ;;  %v859_v7 = vpop.f32.mrf.mxu0 }
 0x17d   :  { %v872_v3 = vadd.f32 %v871_v1, %v857_v25 }
 0x17f   :  { %v925_v4 = vadd.f32 %v921_v0, %v872_v3 }
 0x181   :  { %929 = vst [vmem:[#allocation11] sm:$0xff] %v925_v4 }
 0x182   :  { %v899_v6 = vpop.f32.mrf.mxu3  ;;  %v887_v12 = vpop.f32.mrf.mxu2 }
 0x183   :  { %v900_v29 = vadd.f32 %v899_v6, %v885_v5 }
 0x184   :  { %v873_v8 = vpop.f32.mrf.mxu1 }
 0x185   :  { %v926_v9 = vadd.f32 %v922_v58, %v900_v29  ;;  %v874_v10 = vadd.f32 %v873_v8, %v859_v7 }
 0x187   :  { %930 = vst [vmem:[#allocation11 + $0x8] sm:$0xff] %v926_v9  ;;  %v927_v11 = vadd.f32 %v921_v0, %v874_v10 }
 0x189   :  { %931 = vst [vmem:[#allocation11 + $0x10] sm:$0xff] %v927_v11 }
 0x18a   :  { %v901_v14 = vpop.f32.mrf.mxu3 }
 0x18b   :  { %v902_v15 = vadd.f32 %v901_v14, %v887_v12 }
 0x18d   :  { %v928_v16 = vadd.f32 %v922_v58, %v902_v15 }
 0x18f   :  { %932 = vst [vmem:[#allocation11 + $0x18] sm:$0xff] %v928_v16 }
 0x190   :  { %945 = dma.vmem_to_hbm [thread:$0]  %s938_s15, 512, %s940_s18, [#allocation5], %s1590_s26, %s1590_s26, %s1591_s27  }
 0x191   :  { %1587 = dma.done.wait [#allocation5], 512  }
 0x192   :  { %1588 = vsyncadd [#allocation5], 4294966784 }
 0x193   :  { %950 = vsyncpa [#allocation4], 1 }
 0x194   :  { %951 = vsyncpa [#allocation7], 1 }
 0x195   :  { %952 = vsyncpa [#allocation10], 1 }
 0x196   :  { %953 = vsyncpa [#allocation5], 1 }

</bundles_post_ra>
